<compile_context>
chip_gen: v6e
topology: v6e:2x2x1
jax: 0.10.0
libtpu: 0.0.40
codegen_flags: <defaults>
</compile_context>

<pallas_src>
import functools

import jax
import jax.numpy as jnp
from jax import lax
from jax.experimental import pallas as pl
from jax.experimental.pallas import tpu as pltpu


def _round_up(x, m):
    return (x + m - 1) // m * m


def _sigmoid(x):
    # exp + approx reciprocal both live in the EUP slot (own VLIW slot).
    return pl.reciprocal(1.0 + jnp.exp(-x), approx=True)


def _lstm_kernel(x_ref, wih_ref, whh_ref, b_ref, wp_ref, bp_ref,
                 out_ref, gx_ref, h_ref, c_ref, *, t_chunk):
    """One time-chunk of the LSTM per grid step.

    x_ref   : (t_chunk * Bp, E)      bf16   embedded tokens of this chunk
    wih_ref : (E, 4*Hp)              bf16
    whh_ref : (Hp, 4*Hp)             bf16
    b_ref   : (1, 4*Hp)              f32    b_ih + b_hh (per-gate padded)
    wp_ref  : (Hp, 2)                bf16
    bp_ref  : (1, 2)                 f32
    out_ref : (Bp, 2)                f32    written on the last chunk only
    gx_ref  : (t_chunk * Bp, 4*Hp)   bf16 VMEM scratch (chunk input gates)
    h_ref   : (Bp, Hp)               f32  VMEM scratch (state across chunks)
    c_ref   : (Bp, Hp)               f32  VMEM scratch (state across chunks)
    """
    t = pl.program_id(0)
    B = out_ref.shape[0]          # padded batch  (sublane multiple of 8)
    H = whh_ref.shape[0]          # padded hidden (4*H is a multiple of 128)

    @pl.when(t == 0)
    def _():
        h_ref[...] = jnp.zeros_like(h_ref)
        c_ref[...] = jnp.zeros_like(c_ref)

    # ---- Phase 1: input projection + bias for the whole chunk (one MXU
    #      matmul, off the serial critical path), stored as bf16 -------------
    gx_ref[...] = (jnp.dot(x_ref[...], wih_ref[...],
                           preferred_element_type=jnp.float32)
                   + b_ref[...]).astype(gx_ref.dtype)

    whh = whh_ref[...]            # (Hp, 4Hp) bf16, loaded once per chunk
    # Note: explicitly latching W_hh in the MXU across steps
    # (pltpu.matmul_push_rhs / matmul_acc_lhs / matmul_pop) could cut the
    # per-step weight push further; the packed 4H layout already reduces the
    # per-step RHS stream 16x for H=32, so the portable jnp.dot form is kept.

    # ---- Phase 2: serial recurrence; h/c carried in vector registers -------
    def step(i, carry):
        h, c = carry
        row = pl.multiple_of(i * B, B)           # sublane-aligned slice start
        gates = (gx_ref[pl.ds(row, B), :].astype(jnp.float32)
                 + jnp.dot(h.astype(jnp.bfloat16), whh,
                           preferred_element_type=jnp.float32))
        # PyTorch gate order [i, f, g, o]; static in-vreg lane slices.
        i_g = _sigmoid(gates[:, 0 * H:1 * H])
        f_g = _sigmoid(gates[:, 1 * H:2 * H])
        g_g = jnp.tanh(gates[:, 2 * H:3 * H])
        o_g = _sigmoid(gates[:, 3 * H:4 * H])
        c_new = f_g * c + i_g * g_g
        h_new = o_g * jnp.tanh(c_new)
        return (h_new, c_new)

    h_fin, c_fin = lax.fori_loop(0, t_chunk, step, (h_ref[...], c_ref[...]),
                                 unroll=True)
    h_ref[...] = h_fin
    c_ref[...] = c_fin

    # ---- Final Linear(hidden, 2) on the last hidden state ------------------
    @pl.when(t == pl.num_programs(0) - 1)
    def _():
        out_ref[...] = (jnp.dot(h_fin.astype(jnp.bfloat16), wp_ref[...],
                                preferred_element_type=jnp.float32)
                        + bp_ref[...]).astype(out_ref.dtype)


def _pick_time_chunk(seq_len, max_chunk=32):
    for c in range(min(seq_len, max_chunk), 0, -1):
        if seq_len % c == 0:
            return c
    return seq_len


def _vmem_limit_bytes(t_chunk, batch_p, embed, hidden_p):
    bf16, f32 = 2, 4
    x_blk = t_chunk * batch_p * embed * bf16 * 2        # double-buffered input
    w = (embed * 4 * hidden_p + hidden_p * 4 * hidden_p
         + hidden_p * 2) * bf16 * 2
    biases = (4 * hidden_p + 2) * f32 * 2
    gx = t_chunk * batch_p * 4 * hidden_p * bf16
    state = 2 * batch_p * hidden_p * f32
    out = batch_p * 2 * f32 * 2
    need = x_blk + w + biases + gx + state + out
    return int(min(max(2 * need + (4 << 20), 16 << 20), 64 << 20))


def simple_lstm_forward(seq, params, *, time_chunk=None):
    """seq: (seq_len, batch) int32 token ids. Returns (batch, 2) f32 logits."""
    emb = params["embedding"]              # (vocab, E) bf16
    w_ih_t = params["w_ih_t"]              # (E, 4*Hp)  bf16
    w_hh_t = params["w_hh_t"]              # (Hp, 4*Hp) bf16
    b_gates = params["b_gates"]            # (1, 4*Hp)  f32
    w_pred_t = params["w_pred_t"]          # (Hp, 2)    bf16
    b_pred = params["b_pred"]              # (1, 2)     f32

    seq_len, batch = seq.shape
    embed = emb.shape[1]
    hidden_p = w_hh_t.shape[0]
    batch_p = _round_up(max(batch, 8), 8)  # sublane granule

    if time_chunk is None:
        time_chunk = _pick_time_chunk(seq_len)
    assert seq_len % time_chunk == 0, "time_chunk must divide seq_len"
    num_chunks = seq_len // time_chunk
    rows_per_chunk = time_chunk * batch_p

    # Embedding lookup (gather) is XLA glue; the table is bf16 so the gathered
    # activations hit HBM at half width.  Pad batch to a sublane multiple and
    # flatten (time, batch) so each chunk is one contiguous row block.
    # TODO(synk): fuse the embedding gather into the kernel via scalar-prefetched
    # token ids + per-row DMA instead of materializing x_emb in HBM.
    x_emb = jnp.take(emb, seq, axis=0)                               # (S, B, E)
    x_emb = jnp.pad(x_emb, ((0, 0), (0, batch_p - batch), (0, 0)))   # (S, Bp, E)
    x2d = x_emb.reshape(seq_len * batch_p, embed).astype(jnp.bfloat16)

    kernel = functools.partial(_lstm_kernel, t_chunk=time_chunk)

    preds_p = pl.pallas_call(
        kernel,
        out_shape=jax.ShapeDtypeStruct((batch_p, 2), jnp.float32),
        grid_spec=pltpu.PrefetchScalarGridSpec(
            num_scalar_prefetch=0,
            grid=(num_chunks,),
            in_specs=[
                pl.BlockSpec((rows_per_chunk, embed), lambda t: (t, 0)),
                pl.BlockSpec((embed, 4 * hidden_p), lambda t: (0, 0)),
                pl.BlockSpec((hidden_p, 4 * hidden_p), lambda t: (0, 0)),
                pl.BlockSpec((1, 4 * hidden_p), lambda t: (0, 0)),
                pl.BlockSpec((hidden_p, 2), lambda t: (0, 0)),
                pl.BlockSpec((1, 2), lambda t: (0, 0)),
            ],
            out_specs=pl.BlockSpec((batch_p, 2), lambda t: (0, 0)),
            scratch_shapes=[
                # chunk input-gate pre-activations (bf16 halves VMEM + loads)
                pltpu.VMEM((rows_per_chunk, 4 * hidden_p), jnp.bfloat16),
                pltpu.VMEM((batch_p, hidden_p), jnp.float32),   # h state
                pltpu.VMEM((batch_p, hidden_p), jnp.float32),   # c state
            ],
        ),
        compiler_params=pltpu.CompilerParams(
            dimension_semantics=("arbitrary",),   # recurrence is sequential
            vmem_limit_bytes=_vmem_limit_bytes(time_chunk, batch_p,
                                               embed, hidden_p)),
    )(x2d, w_ih_t, w_hh_t, b_gates, w_pred_t, b_pred)

    return preds_p[:batch]


def init_raw_params(key, vocab_size, embedding_dim, hidden_size):
    """Raw parameters in PyTorch layout, f32 (the module's true parameters)."""
    ks = jax.random.split(key, 7)
    scale = 0.1
    return {
        "embedding": scale * jax.random.normal(ks[6], (vocab_size, embedding_dim), jnp.float32),
        "w_ih": scale * jax.random.normal(ks[0], (4 * hidden_size, embedding_dim), jnp.float32),
        "w_hh": scale * jax.random.normal(ks[1], (4 * hidden_size, hidden_size), jnp.float32),
        "b_ih": scale * jax.random.normal(ks[2], (4 * hidden_size,), jnp.float32),
        "b_hh": scale * jax.random.normal(ks[3], (4 * hidden_size,), jnp.float32),
        "w_pred": scale * jax.random.normal(ks[4], (2, hidden_size), jnp.float32),
        "b_pred": scale * jax.random.normal(ks[5], (2,), jnp.float32),
    }


def prepare_params(raw, hidden_size, embedding_dim):
    """Per-gate pad hidden to a multiple of 32 (so 4*Hp is a 128-lane multiple),
    pre-transpose, and cast matmul weights to bf16.  Padding is exact: padded
    hidden units get zero pre-activations (i=f=o=0.5, g=0, c0=0 -> stay 0) and
    padded weight rows/columns are 0, so the forward pass is unchanged.
    When H is a multiple of 128 this is the fully lane-aligned layout."""
    H, E = hidden_size, embedding_dim
    Hp = _round_up(H, 32)

    w_ih = raw["w_ih"].reshape(4, H, E)                       # (4, H, E)
    w_ih = jnp.pad(w_ih, ((0, 0), (0, Hp - H), (0, 0)))       # (4, Hp, E)
    w_ih_t = w_ih.reshape(4 * Hp, E).T                        # (E, 4Hp)

    w_hh = raw["w_hh"].reshape(4, H, H)                       # (4, H, H)
    w_hh = jnp.pad(w_hh, ((0, 0), (0, Hp - H), (0, Hp - H)))  # (4, Hp, Hp)
    w_hh_t = w_hh.reshape(4 * Hp, Hp).T                       # (Hp, 4Hp)

    b = (raw["b_ih"] + raw["b_hh"]).reshape(4, H)
    b = jnp.pad(b, ((0, 0), (0, Hp - H))).reshape(1, 4 * Hp)  # (1, 4Hp)

    w_pred = jnp.pad(raw["w_pred"], ((0, 0), (0, Hp - H)))    # (2, Hp)

    return {
        "embedding": raw["embedding"].astype(jnp.bfloat16),   # half the gather bytes
        "w_ih_t": w_ih_t.astype(jnp.bfloat16),
        "w_hh_t": w_hh_t.astype(jnp.bfloat16),
        "b_gates": b.astype(jnp.float32),
        "w_pred_t": w_pred.T.astype(jnp.bfloat16),
        "b_pred": raw["b_pred"][None, :].astype(jnp.float32),
    }


def _reference_forward(seq, raw):
    """Pure-JAX f32 reference with the original (unpadded) PyTorch-layout
    params — true module semantics for the correctness check."""
    H = raw["w_hh"].shape[1]
    B = seq.shape[1]
    x_emb = jnp.take(raw["embedding"], seq, axis=0)           # (S, B, E)
    w_ih_t = raw["w_ih"].T
    w_hh_t = raw["w_hh"].T
    b = (raw["b_ih"] + raw["b_hh"])[None, :]

    def step(carry, x_t):
        h, c = carry
        gates = x_t @ w_ih_t + h @ w_hh_t + b
        i = jax.nn.sigmoid(gates[:, 0 * H:1 * H])
        f = jax.nn.sigmoid(gates[:, 1 * H:2 * H])
        g = jnp.tanh(gates[:, 2 * H:3 * H])
        o = jax.nn.sigmoid(gates[:, 3 * H:4 * H])
        c = f * c + i * g
        h = o * jnp.tanh(c)
        return (h, c), None

    h0 = jnp.zeros((B, H), jnp.float32)
    c0 = jnp.zeros((B, H), jnp.float32)
    (h_fin, _), _ = lax.scan(step, (h0, c0), x_emb)
    return h_fin @ raw["w_pred"].T + raw["b_pred"][None, :]


if __name__ == "__main__":
    vocab_size = 200
    embedding_dim = 16
    hidden_size = 32
    seq_len = 8
    batch = 2

    key = jax.random.PRNGKey(0)
    pkey, skey = jax.random.split(key)
    raw = init_raw_params(pkey, vocab_size, embedding_dim, hidden_size)
    params = prepare_params(raw, hidden_size, embedding_dim)
    seq = jax.random.randint(skey, (seq_len, batch), 0, vocab_size, dtype=jnp.int32)

    # time_chunk=4 -> grid=(2,): exercises the chunked recurrence with h/c
    # carried in VMEM scratch across grid steps.
    preds = jax.block_until_ready(simple_lstm_forward(seq, params, time_chunk=4))
    ref = jax.block_until_ready(_reference_forward(seq, raw))

    assert preds.shape == (batch, 2)
    # Kernel uses bf16 matmul operands / bf16 gx (f32 accumulation and gate
    # math) and an EUP approx reciprocal in sigmoid; f32 reference needs a
    # modest tolerance, still far below any gate-order/padding-bug scale.
    assert jnp.allclose(preds, ref, atol=2e-2, rtol=2e-2), (preds, ref)
    print("KERNEL_OK")
</pallas_src>

<mosaic_0001>
module attributes {stable_mosaic.version = 11 : i64} {
  func.func @_lstm_kernel(%arg0: i32, %arg1: memref<32x16xbf16, #tpu.memory_space<vmem>>, %arg2: memref<16x128xbf16, #tpu.memory_space<vmem>>, %arg3: memref<32x128xbf16, #tpu.memory_space<vmem>>, %arg4: memref<1x128xf32, #tpu.memory_space<vmem>>, %arg5: memref<32x2xbf16, #tpu.memory_space<vmem>>, %arg6: memref<1x2xf32, #tpu.memory_space<vmem>>, %arg7: memref<8x2xf32, #tpu.memory_space<vmem>>, %arg8: memref<32x128xbf16, #tpu.memory_space<vmem>>, %arg9: memref<8x32xf32, #tpu.memory_space<vmem>>, %arg10: memref<8x32xf32, #tpu.memory_space<vmem>>) attributes {dimension_semantics = [#tpu.dimension_semantics<arbitrary>], iteration_bounds = array<i64: 2>, scalar_prefetch = 0 : i64, scratch_operands = 3 : i64, tpu.core_type = #tpu.core_type<tc>, window_params = [{transform_indices = @transform_0, window_bounds = array<i64: 32, 16>}, {pipeline_mode = #tpu.pipeline_mode<synchronous>, transform_indices = @transform_1, window_bounds = array<i64: 16, 128>}, {pipeline_mode = #tpu.pipeline_mode<synchronous>, transform_indices = @transform_2, window_bounds = array<i64: 32, 128>}, {pipeline_mode = #tpu.pipeline_mode<synchronous>, transform_indices = @transform_3, window_bounds = array<i64: 1, 128>}, {pipeline_mode = #tpu.pipeline_mode<synchronous>, transform_indices = @transform_4, window_bounds = array<i64: 32, 2>}, {pipeline_mode = #tpu.pipeline_mode<synchronous>, transform_indices = @transform_5, window_bounds = array<i64: 1, 2>}, {pipeline_mode = #tpu.pipeline_mode<synchronous>, transform_indices = @transform_6, window_bounds = array<i64: 8, 2>}]} {
    %c0_i32 = arith.constant 0 : i32
    %0 = arith.cmpi eq, %arg0, %c0_i32 : i32
    %1 = arith.extui %0 : i1 to i32
    %c0_i32_0 = arith.constant 0 : i32
    %2 = arith.cmpi ne, %1, %c0_i32_0 : i32
    scf.if %2 {
      %cst_56 = arith.constant 0.000000e+00 : f32
      %163 = vector.broadcast %cst_56 : f32 to vector<8x32xf32>
      %c0_57 = arith.constant 0 : index
      %c0_58 = arith.constant 0 : index
      %164 = vector.load %arg9[%c0_57, %c0_58] : memref<8x32xf32, #tpu.memory_space<vmem>>, vector<8x32xf32>
      tpu.vector_store %arg9[%c0_57, %c0_58], %163 {strides = array<i32>} : memref<8x32xf32, #tpu.memory_space<vmem>>, vector<8x32xf32>,
      %cst_59 = arith.constant 0.000000e+00 : f32
      %165 = vector.broadcast %cst_59 : f32 to vector<8x32xf32>
      %c0_60 = arith.constant 0 : index
      %c0_61 = arith.constant 0 : index
      %166 = vector.load %arg10[%c0_60, %c0_61] : memref<8x32xf32, #tpu.memory_space<vmem>>, vector<8x32xf32>
      tpu.vector_store %arg10[%c0_60, %c0_61], %165 {strides = array<i32>} : memref<8x32xf32, #tpu.memory_space<vmem>>, vector<8x32xf32>,
    } else {
    }
    %c0 = arith.constant 0 : index
    %c0_1 = arith.constant 0 : index
    %3 = vector.load %arg1[%c0, %c0_1] : memref<32x16xbf16, #tpu.memory_space<vmem>>, vector<32x16xbf16>
    %c0_2 = arith.constant 0 : index
    %c0_3 = arith.constant 0 : index
    %4 = vector.load %arg2[%c0_2, %c0_3] : memref<16x128xbf16, #tpu.memory_space<vmem>>, vector<16x128xbf16>
    %cst = arith.constant dense<0.000000e+00> : vector<32x128xf32>
    %5 = tpu.matmul %3, %4, %cst {dimension_numbers = #tpu.dot_dimension_numbers<[1], [0], [0], [1], [0, 0, 1, 1], [], []>} : vector<32x16xbf16>, vector<16x128xbf16>, vector<32x128xf32> -> vector<32x128xf32>
    %c0_4 = arith.constant 0 : index
    %c0_5 = arith.constant 0 : index
    %6 = vector.load %arg4[%c0_4, %c0_5] : memref<1x128xf32, #tpu.memory_space<vmem>>, vector<1x128xf32>
    %7 = vector.broadcast %6 : vector<1x128xf32> to vector<32x128xf32>
    %8 = arith.addf %5, %7 : vector<32x128xf32>
    %9 = arith.truncf %8 : vector<32x128xf32> to vector<32x128xbf16>
    %c0_6 = arith.constant 0 : index
    %c0_7 = arith.constant 0 : index
    %10 = vector.load %arg8[%c0_6, %c0_7] : memref<32x128xbf16, #tpu.memory_space<vmem>>, vector<32x128xbf16>
    tpu.vector_store %arg8[%c0_6, %c0_7], %9 {strides = array<i32>} : memref<32x128xbf16, #tpu.memory_space<vmem>>, vector<32x128xbf16>,
    %c0_8 = arith.constant 0 : index
    %c0_9 = arith.constant 0 : index
    %11 = vector.load %arg3[%c0_8, %c0_9] : memref<32x128xbf16, #tpu.memory_space<vmem>>, vector<32x128xbf16>
    %c0_10 = arith.constant 0 : index
    %c0_11 = arith.constant 0 : index
    %12 = vector.load %arg9[%c0_10, %c0_11] : memref<8x32xf32, #tpu.memory_space<vmem>>, vector<8x32xf32>
    %c0_12 = arith.constant 0 : index
    %c0_13 = arith.constant 0 : index
    %13 = vector.load %arg10[%c0_12, %c0_13] : memref<8x32xf32, #tpu.memory_space<vmem>>, vector<8x32xf32>
    %c0_i32_14 = arith.constant 0 : i32
    %c8_i32 = arith.constant 8 : i32
    %14 = arith.muli %c0_i32_14, %c8_i32 : i32
    %15 = tpu.assume_multiple %14, 8 : i32
    %16 = arith.index_cast %15 : i32 to index
    %c0_15 = arith.constant 0 : index
    %17 = vector.load %arg8[%16, %c0_15] : memref<32x128xbf16, #tpu.memory_space<vmem>>, vector<8x128xbf16>
    %18 = arith.extf %17 : vector<8x128xbf16> to vector<8x128xf32>
    %19 = arith.truncf %12 : vector<8x32xf32> to vector<8x32xbf16>
    %cst_16 = arith.constant dense<0.000000e+00> : vector<8x128xf32>
    %20 = tpu.matmul %19, %11, %cst_16 {dimension_numbers = #tpu.dot_dimension_numbers<[1], [0], [0], [1], [0, 0, 1, 1], [], []>} : vector<8x32xbf16>, vector<32x128xbf16>, vector<8x128xf32> -> vector<8x128xf32>
    %21 = arith.addf %18, %20 : vector<8x128xf32>
    %22 = vector.extract_strided_slice %21 {offsets = [0, 0], sizes = [8, 32], strides = [1, 1]} : vector<8x128xf32> to vector<8x32xf32>
    %cst_17 = arith.constant 0.000000e+00 : f32
    %23 = vector.broadcast %cst_17 : f32 to vector<8x32xf32>
    %24 = arith.subf %23, %22 : vector<8x32xf32>
    %25 = math.exp %24 : vector<8x32xf32>
    %cst_18 = arith.constant 1.000000e+00 : f32
    %26 = vector.broadcast %cst_18 : f32 to vector<8x32xf32>
    %27 = arith.addf %26, %25 : vector<8x32xf32>
    %28 = tpu.reciprocal %27 {approx = true} : vector<8x32xf32> -> vector<8x32xf32>
    %29 = vector.extract_strided_slice %21 {offsets = [0, 32], sizes = [8, 32], strides = [1, 1]} : vector<8x128xf32> to vector<8x32xf32>
    %cst_19 = arith.constant 0.000000e+00 : f32
    %30 = vector.broadcast %cst_19 : f32 to vector<8x32xf32>
    %31 = arith.subf %30, %29 : vector<8x32xf32>
    %32 = math.exp %31 : vector<8x32xf32>
    %cst_20 = arith.constant 1.000000e+00 : f32
    %33 = vector.broadcast %cst_20 : f32 to vector<8x32xf32>
    %34 = arith.addf %33, %32 : vector<8x32xf32>
    %35 = tpu.reciprocal %34 {approx = true} : vector<8x32xf32> -> vector<8x32xf32>
    %36 = vector.extract_strided_slice %21 {offsets = [0, 64], sizes = [8, 32], strides = [1, 1]} : vector<8x128xf32> to vector<8x32xf32>
    %37 = math.tanh %36 : vector<8x32xf32>
    %38 = vector.extract_strided_slice %21 {offsets = [0, 96], sizes = [8, 32], strides = [1, 1]} : vector<8x128xf32> to vector<8x32xf32>
    %cst_21 = arith.constant 0.000000e+00 : f32
    %39 = vector.broadcast %cst_21 : f32 to vector<8x32xf32>
    %40 = arith.subf %39, %38 : vector<8x32xf32>
    %41 = math.exp %40 : vector<8x32xf32>
    %cst_22 = arith.constant 1.000000e+00 : f32
    %42 = vector.broadcast %cst_22 : f32 to vector<8x32xf32>
    %43 = arith.addf %42, %41 : vector<8x32xf32>
    %44 = tpu.reciprocal %43 {approx = true} : vector<8x32xf32> -> vector<8x32xf32>
    %45 = arith.mulf %35, %13 : vector<8x32xf32>
    %46 = arith.mulf %28, %37 : vector<8x32xf32>
    %47 = arith.addf %45, %46 : vector<8x32xf32>
    %48 = math.tanh %47 : vector<8x32xf32>
    %49 = arith.mulf %44, %48 : vector<8x32xf32>
    %c1_i32 = arith.constant 1 : i32
    %c8_i32_23 = arith.constant 8 : i32
    %50 = arith.muli %c1_i32, %c8_i32_23 : i32
    %51 = tpu.assume_multiple %50, 8 : i32
    %52 = arith.index_cast %51 : i32 to index
    %c0_24 = arith.constant 0 : index
    %53 = vector.load %arg8[%52, %c0_24] : memref<32x128xbf16, #tpu.memory_space<vmem>>, vector<8x128xbf16>
    %54 = arith.extf %53 : vector<8x128xbf16> to vector<8x128xf32>
    %55 = arith.truncf %49 : vector<8x32xf32> to vector<8x32xbf16>
    %cst_25 = arith.constant dense<0.000000e+00> : vector<8x128xf32>
    %56 = tpu.matmul %55, %11, %cst_25 {dimension_numbers = #tpu.dot_dimension_numbers<[1], [0], [0], [1], [0, 0, 1, 1], [], []>} : vector<8x32xbf16>, vector<32x128xbf16>, vector<8x128xf32> -> vector<8x128xf32>
    %57 = arith.addf %54, %56 : vector<8x128xf32>
    %58 = vector.extract_strided_slice %57 {offsets = [0, 0], sizes = [8, 32], strides = [1, 1]} : vector<8x128xf32> to vector<8x32xf32>
    %cst_26 = arith.constant 0.000000e+00 : f32
    %59 = vector.broadcast %cst_26 : f32 to vector<8x32xf32>
    %60 = arith.subf %59, %58 : vector<8x32xf32>
    %61 = math.exp %60 : vector<8x32xf32>
    %cst_27 = arith.constant 1.000000e+00 : f32
    %62 = vector.broadcast %cst_27 : f32 to vector<8x32xf32>
    %63 = arith.addf %62, %61 : vector<8x32xf32>
    %64 = tpu.reciprocal %63 {approx = true} : vector<8x32xf32> -> vector<8x32xf32>
    %65 = vector.extract_strided_slice %57 {offsets = [0, 32], sizes = [8, 32], strides = [1, 1]} : vector<8x128xf32> to vector<8x32xf32>
    %cst_28 = arith.constant 0.000000e+00 : f32
    %66 = vector.broadcast %cst_28 : f32 to vector<8x32xf32>
    %67 = arith.subf %66, %65 : vector<8x32xf32>
    %68 = math.exp %67 : vector<8x32xf32>
    %cst_29 = arith.constant 1.000000e+00 : f32
    %69 = vector.broadcast %cst_29 : f32 to vector<8x32xf32>
    %70 = arith.addf %69, %68 : vector<8x32xf32>
    %71 = tpu.reciprocal %70 {approx = true} : vector<8x32xf32> -> vector<8x32xf32>
    %72 = vector.extract_strided_slice %57 {offsets = [0, 64], sizes = [8, 32], strides = [1, 1]} : vector<8x128xf32> to vector<8x32xf32>
    %73 = math.tanh %72 : vector<8x32xf32>
    %74 = vector.extract_strided_slice %57 {offsets = [0, 96], sizes = [8, 32], strides = [1, 1]} : vector<8x128xf32> to vector<8x32xf32>
    %cst_30 = arith.constant 0.000000e+00 : f32
    %75 = vector.broadcast %cst_30 : f32 to vector<8x32xf32>
    %76 = arith.subf %75, %74 : vector<8x32xf32>
    %77 = math.exp %76 : vector<8x32xf32>
    %cst_31 = arith.constant 1.000000e+00 : f32
    %78 = vector.broadcast %cst_31 : f32 to vector<8x32xf32>
    %79 = arith.addf %78, %77 : vector<8x32xf32>
    %80 = tpu.reciprocal %79 {approx = true} : vector<8x32xf32> -> vector<8x32xf32>
    %81 = arith.mulf %71, %47 : vector<8x32xf32>
    %82 = arith.mulf %64, %73 : vector<8x32xf32>
    %83 = arith.addf %81, %82 : vector<8x32xf32>
    %84 = math.tanh %83 : vector<8x32xf32>
    %85 = arith.mulf %80, %84 : vector<8x32xf32>
    %c2_i32 = arith.constant 2 : i32
    %c8_i32_32 = arith.constant 8 : i32
    %86 = arith.muli %c2_i32, %c8_i32_32 : i32
    %87 = tpu.assume_multiple %86, 8 : i32
    %88 = arith.index_cast %87 : i32 to index
    %c0_33 = arith.constant 0 : index
    %89 = vector.load %arg8[%88, %c0_33] : memref<32x128xbf16, #tpu.memory_space<vmem>>, vector<8x128xbf16>
    %90 = arith.extf %89 : vector<8x128xbf16> to vector<8x128xf32>
    %91 = arith.truncf %85 : vector<8x32xf32> to vector<8x32xbf16>
    %cst_34 = arith.constant dense<0.000000e+00> : vector<8x128xf32>
    %92 = tpu.matmul %91, %11, %cst_34 {dimension_numbers = #tpu.dot_dimension_numbers<[1], [0], [0], [1], [0, 0, 1, 1], [], []>} : vector<8x32xbf16>, vector<32x128xbf16>, vector<8x128xf32> -> vector<8x128xf32>
    %93 = arith.addf %90, %92 : vector<8x128xf32>
    %94 = vector.extract_strided_slice %93 {offsets = [0, 0], sizes = [8, 32], strides = [1, 1]} : vector<8x128xf32> to vector<8x32xf32>
    %cst_35 = arith.constant 0.000000e+00 : f32
    %95 = vector.broadcast %cst_35 : f32 to vector<8x32xf32>
    %96 = arith.subf %95, %94 : vector<8x32xf32>
    %97 = math.exp %96 : vector<8x32xf32>
    %cst_36 = arith.constant 1.000000e+00 : f32
    %98 = vector.broadcast %cst_36 : f32 to vector<8x32xf32>
    %99 = arith.addf %98, %97 : vector<8x32xf32>
    %100 = tpu.reciprocal %99 {approx = true} : vector<8x32xf32> -> vector<8x32xf32>
    %101 = vector.extract_strided_slice %93 {offsets = [0, 32], sizes = [8, 32], strides = [1, 1]} : vector<8x128xf32> to vector<8x32xf32>
    %cst_37 = arith.constant 0.000000e+00 : f32
    %102 = vector.broadcast %cst_37 : f32 to vector<8x32xf32>
    %103 = arith.subf %102, %101 : vector<8x32xf32>
    %104 = math.exp %103 : vector<8x32xf32>
    %cst_38 = arith.constant 1.000000e+00 : f32
    %105 = vector.broadcast %cst_38 : f32 to vector<8x32xf32>
    %106 = arith.addf %105, %104 : vector<8x32xf32>
    %107 = tpu.reciprocal %106 {approx = true} : vector<8x32xf32> -> vector<8x32xf32>
    %108 = vector.extract_strided_slice %93 {offsets = [0, 64], sizes = [8, 32], strides = [1, 1]} : vector<8x128xf32> to vector<8x32xf32>
    %109 = math.tanh %108 : vector<8x32xf32>
    %110 = vector.extract_strided_slice %93 {offsets = [0, 96], sizes = [8, 32], strides = [1, 1]} : vector<8x128xf32> to vector<8x32xf32>
    %cst_39 = arith.constant 0.000000e+00 : f32
    %111 = vector.broadcast %cst_39 : f32 to vector<8x32xf32>
    %112 = arith.subf %111, %110 : vector<8x32xf32>
    %113 = math.exp %112 : vector<8x32xf32>
    %cst_40 = arith.constant 1.000000e+00 : f32
    %114 = vector.broadcast %cst_40 : f32 to vector<8x32xf32>
    %115 = arith.addf %114, %113 : vector<8x32xf32>
    %116 = tpu.reciprocal %115 {approx = true} : vector<8x32xf32> -> vector<8x32xf32>
    %117 = arith.mulf %107, %83 : vector<8x32xf32>
    %118 = arith.mulf %100, %109 : vector<8x32xf32>
    %119 = arith.addf %117, %118 : vector<8x32xf32>
    %120 = math.tanh %119 : vector<8x32xf32>
    %121 = arith.mulf %116, %120 : vector<8x32xf32>
    %c3_i32 = arith.constant 3 : i32
    %c8_i32_41 = arith.constant 8 : i32
    %122 = arith.muli %c3_i32, %c8_i32_41 : i32
    %123 = tpu.assume_multiple %122, 8 : i32
    %124 = arith.index_cast %123 : i32 to index
    %c0_42 = arith.constant 0 : index
    %125 = vector.load %arg8[%124, %c0_42] : memref<32x128xbf16, #tpu.memory_space<vmem>>, vector<8x128xbf16>
    %126 = arith.extf %125 : vector<8x128xbf16> to vector<8x128xf32>
    %127 = arith.truncf %121 : vector<8x32xf32> to vector<8x32xbf16>
    %cst_43 = arith.constant dense<0.000000e+00> : vector<8x128xf32>
    %128 = tpu.matmul %127, %11, %cst_43 {dimension_numbers = #tpu.dot_dimension_numbers<[1], [0], [0], [1], [0, 0, 1, 1], [], []>} : vector<8x32xbf16>, vector<32x128xbf16>, vector<8x128xf32> -> vector<8x128xf32>
    %129 = arith.addf %126, %128 : vector<8x128xf32>
    %130 = vector.extract_strided_slice %129 {offsets = [0, 0], sizes = [8, 32], strides = [1, 1]} : vector<8x128xf32> to vector<8x32xf32>
    %cst_44 = arith.constant 0.000000e+00 : f32
    %131 = vector.broadcast %cst_44 : f32 to vector<8x32xf32>
    %132 = arith.subf %131, %130 : vector<8x32xf32>
    %133 = math.exp %132 : vector<8x32xf32>
    %cst_45 = arith.constant 1.000000e+00 : f32
    %134 = vector.broadcast %cst_45 : f32 to vector<8x32xf32>
    %135 = arith.addf %134, %133 : vector<8x32xf32>
    %136 = tpu.reciprocal %135 {approx = true} : vector<8x32xf32> -> vector<8x32xf32>
    %137 = vector.extract_strided_slice %129 {offsets = [0, 32], sizes = [8, 32], strides = [1, 1]} : vector<8x128xf32> to vector<8x32xf32>
    %cst_46 = arith.constant 0.000000e+00 : f32
    %138 = vector.broadcast %cst_46 : f32 to vector<8x32xf32>
    %139 = arith.subf %138, %137 : vector<8x32xf32>
    %140 = math.exp %139 : vector<8x32xf32>
    %cst_47 = arith.constant 1.000000e+00 : f32
    %141 = vector.broadcast %cst_47 : f32 to vector<8x32xf32>
    %142 = arith.addf %141, %140 : vector<8x32xf32>
    %143 = tpu.reciprocal %142 {approx = true} : vector<8x32xf32> -> vector<8x32xf32>
    %144 = vector.extract_strided_slice %129 {offsets = [0, 64], sizes = [8, 32], strides = [1, 1]} : vector<8x128xf32> to vector<8x32xf32>
    %145 = math.tanh %144 : vector<8x32xf32>
    %146 = vector.extract_strided_slice %129 {offsets = [0, 96], sizes = [8, 32], strides = [1, 1]} : vector<8x128xf32> to vector<8x32xf32>
    %cst_48 = arith.constant 0.000000e+00 : f32
    %147 = vector.broadcast %cst_48 : f32 to vector<8x32xf32>
    %148 = arith.subf %147, %146 : vector<8x32xf32>
    %149 = math.exp %148 : vector<8x32xf32>
    %cst_49 = arith.constant 1.000000e+00 : f32
    %150 = vector.broadcast %cst_49 : f32 to vector<8x32xf32>
    %151 = arith.addf %150, %149 : vector<8x32xf32>
    %152 = tpu.reciprocal %151 {approx = true} : vector<8x32xf32> -> vector<8x32xf32>
    %153 = arith.mulf %143, %119 : vector<8x32xf32>
    %154 = arith.mulf %136, %145 : vector<8x32xf32>
    %155 = arith.addf %153, %154 : vector<8x32xf32>
    %156 = math.tanh %155 : vector<8x32xf32>
    %157 = arith.mulf %152, %156 : vector<8x32xf32>
    %c4_i32 = arith.constant 4 : i32
    %c0_50 = arith.constant 0 : index
    %c0_51 = arith.constant 0 : index
    %158 = vector.load %arg9[%c0_50, %c0_51] : memref<8x32xf32, #tpu.memory_space<vmem>>, vector<8x32xf32>
    tpu.vector_store %arg9[%c0_50, %c0_51], %157 {strides = array<i32>} : memref<8x32xf32, #tpu.memory_space<vmem>>, vector<8x32xf32>,
    %c0_52 = arith.constant 0 : index
    %c0_53 = arith.constant 0 : index
    %159 = vector.load %arg10[%c0_52, %c0_53] : memref<8x32xf32, #tpu.memory_space<vmem>>, vector<8x32xf32>
    tpu.vector_store %arg10[%c0_52, %c0_53], %155 {strides = array<i32>} : memref<8x32xf32, #tpu.memory_space<vmem>>, vector<8x32xf32>,
    %c1_i32_54 = arith.constant 1 : i32
    %160 = arith.cmpi eq, %arg0, %c1_i32_54 : i32
    %161 = arith.extui %160 : i1 to i32
    %c0_i32_55 = arith.constant 0 : i32
    %162 = arith.cmpi ne, %161, %c0_i32_55 : i32
    scf.if %162 {
      %163 = arith.truncf %157 : vector<8x32xf32> to vector<8x32xbf16>
      %c0_56 = arith.constant 0 : index
      %c0_57 = arith.constant 0 : index
      %164 = vector.load %arg5[%c0_56, %c0_57] : memref<32x2xbf16, #tpu.memory_space<vmem>>, vector<32x2xbf16>
      %cst_58 = arith.constant dense<0.000000e+00> : vector<8x2xf32>
      %165 = tpu.matmul %163, %164, %cst_58 {dimension_numbers = #tpu.dot_dimension_numbers<[1], [0], [0], [1], [0, 0, 1, 1], [], []>} : vector<8x32xbf16>, vector<32x2xbf16>, vector<8x2xf32> -> vector<8x2xf32>
      %c0_59 = arith.constant 0 : index
      %c0_60 = arith.constant 0 : index
      %166 = vector.load %arg6[%c0_59, %c0_60] : memref<1x2xf32, #tpu.memory_space<vmem>>, vector<1x2xf32>
      %167 = vector.broadcast %166 : vector<1x2xf32> to vector<8x2xf32>
      %168 = arith.addf %165, %167 : vector<8x2xf32>
      %c0_61 = arith.constant 0 : index
      %c0_62 = arith.constant 0 : index
      %169 = vector.load %arg7[%c0_61, %c0_62] : memref<8x2xf32, #tpu.memory_space<vmem>>, vector<8x2xf32>
      tpu.vector_store %arg7[%c0_61, %c0_62], %168 {strides = array<i32>} : memref<8x2xf32, #tpu.memory_space<vmem>>, vector<8x2xf32>,
    } else {
    }
    return
  }
  func.func @transform_0(%arg0: i32) -> (i32, i32) {
    %c0_i32 = arith.constant 0 : i32
    %c0_i32_0 = arith.constant 0 : i32
    return %arg0, %c0_i32 : i32, i32
  }
  func.func @transform_1(%arg0: i32) -> (i32, i32) {
    %c0_i32 = arith.constant 0 : i32
    %c0_i32_0 = arith.constant 0 : i32
    %c0_i32_1 = arith.constant 0 : i32
    return %c0_i32, %c0_i32_0 : i32, i32
  }
  func.func @transform_2(%arg0: i32) -> (i32, i32) {
    %c0_i32 = arith.constant 0 : i32
    %c0_i32_0 = arith.constant 0 : i32
    %c0_i32_1 = arith.constant 0 : i32
    return %c0_i32, %c0_i32_0 : i32, i32
  }
  func.func @transform_3(%arg0: i32) -> (i32, i32) {
    %c0_i32 = arith.constant 0 : i32
    %c0_i32_0 = arith.constant 0 : i32
    %c0_i32_1 = arith.constant 0 : i32
    return %c0_i32, %c0_i32_0 : i32, i32
  }
  func.func @transform_4(%arg0: i32) -> (i32, i32) {
    %c0_i32 = arith.constant 0 : i32
    %c0_i32_0 = arith.constant 0 : i32
    %c0_i32_1 = arith.constant 0 : i32
    return %c0_i32, %c0_i32_0 : i32, i32
  }
  func.func @transform_5(%arg0: i32) -> (i32, i32) {
    %c0_i32 = arith.constant 0 : i32
    %c0_i32_0 = arith.constant 0 : i32
    %c0_i32_1 = arith.constant 0 : i32
    return %c0_i32, %c0_i32_0 : i32, i32
  }
  func.func @transform_6(%arg0: i32) -> (i32, i32) {
    %c0_i32 = arith.constant 0 : i32
    %c0_i32_0 = arith.constant 0 : i32
    %c0_i32_1 = arith.constant 0 : i32
    return %c0_i32, %c0_i32_0 : i32, i32
  }
}

</mosaic_0001>

<bundles_post_ra>
// kernel: tpu_custom_call.1
= control target key start
LH: loop header
LB: loop body
LE: loop exit
PB: predicated region body
PF: predicated region fallthrough
CT: control target
= control target key end

     0   :  { %s998_s21 = smov 0   ;;  %s1093_s0 = inlined_call_operand.vmem [shape: bf16[64,16], index: 0, kind: input, shape index: {}]   ;;  %s1094_s1 = inlined_call_operand.vmem [shape: bf16[16,128], index: 1, kind: input, shape index: {}]   ;;  %s1095_s2 = inlined_call_operand.vmem [shape: bf16[32,128], index: 2, kind: input, shape index: {}]   ;;  %s1096_s3 = inlined_call_operand.vmem [shape: f32[1,128], index: 3, kind: input, shape index: {}]   ;;  %s1097_s4 = inlined_call_operand.vmem [shape: bf16[32,2], index: 4, kind: input, shape index: {}]   ;;  %s1098_s5 = inlined_call_operand.vmem [shape: f32[1,2], index: 5, kind: input, shape index: {}]   ;;  %s1099_s6 = inlined_call_operand.vmem [shape: f32[8,2], index: 6, kind: output, shape index: {}]  }
   0x1 LB: > { %s1004_s22 = sadd.s32 4294967295, %s952_s21   ;;  %p784_p0 = scmp.ge.s32.totalorder %s952_s21, 1  ;;  %s952_s21 = sphi %s998_s21, %s16_s21  }
   0x2   : > { %p208_p1 = scmp.lt.s32.totalorder %s952_s21, 3 }
   0x4   : > { %p209_p2 = pnand %p784_p0, %p208_p1 }
   0x5   : > { %s785_s23 = sshll.u32 (!%p209_p2), %s1004_s22, 2  ;;  %p787_p4 = scmp.ne.s32.totalorder (!%p209_p2), %s1004_s22, 0 }
   0x6   : > { %212 = sbr.rel (%p209_p2) target bundleno = 3122 (0xc32), region = 44  ;;  %p234_p3 = scmp.lt.s32.totalorder (!%p209_p2), %s785_s23, 7 }
   0xb   : > { %s1101_s23 = smov (!%p234_p3, %s785_s23), 7  ;;  %243 = sbr.rel (%p787_p4) target bundleno = 18 (0x12), region = 48 }
   0xc   : > { %s786_s24 = sshll.u32 %s1101_s23, 2 }
   0xd   : > { %s237_s27 = scalar_lea.vmem %s1093_s0, %s786_s24 }
  0x10   : > { %vm244_vm0 = vcmask 261120   ;;  %v954_v0 = vmov 0.0  }
  0x11   : > { %245 = vst.msk [vmem:[#allocation3] sm:$0xff] %vm244_vm0, %v954_v0  ;;  %246 = vst.msk [vmem:[#allocation4] sm:$0xff] %vm244_vm0, %v954_v0 }
  0x12 PF: > { %v907_v1 = vld [vmem:[%s1094_s1] sm:$0xff]   ;;  %vm276_vm1 = vcmask 130048   ;;  %v909_v3 = vld [vmem:[%s237_s27 + $0x8] sm:$0xff]   ;;  %v955_v4 = vmov 0.0   ;;  %vm956_vm2 = vmmov 0   ;;  %vm373_vm3 = vcmask 261120  }
  0x13   : > { %v908_v2 = vld [vmem:[%s237_s27] sm:$0xff]   ;;  %844 = vmatprep.subr.bf16.mxu0 %v907_v1  ;;  %850 = vmatprep.subr.bf16.mxu1 %v955_v4  ;;  %v1020_v5 = vld [vmem:[%s1095_s2 + $0x8] sm:$0xff]   ;;  %s957_s12 = smov 64   ;;  %s958_s13 = smov 32  }
  0x14   : > { %845 = vmatpush3.bf16.msra.mxu0 %v907_v1  ;;  %846 = vmatprep.mubr.msk.bf16.mxu0 %vm276_vm1, %v908_v2  ;;  %v1029_v6 = vld [vmem:[%s1095_s2] sm:$0xff]   ;;  %s959_s14 = smov 96   ;;  %p804_p5 = scmp.ne.s32.totalorder %s1004_s22, 1 }
  0x15   : > { %854 = vmatprep.mubr.msk.bf16.mxu1 %vm956_vm2, %v955_v4  ;;  %858 = vmatprep.subr.bf16.mxu0 %v955_v4  ;;  %v788_v10 = vld [vmem:[%s1096_s3] ss:$0 sm:$0xff]  ;;  %s961_s17 = smov (!%p804_p5), 32  }
  0x16   : > { %851 = vmatpush3.bf16.msra.mxu1 %v1020_v5 }
  0x17   : > { %847 = vmatmul.mubr.msk.bf16.vlgmr.msra.gmra.mxu0 %vm276_vm1, %v909_v3  ;;  %852 = vmatprep.subr.bf16.mxu1 %v955_v4 }
  0x18   : > { %v356_v7 = vld [vmem:[#allocation3] sm:$0xff]  ;;  %859 = vmatpush3.bf16.msra.mxu0 %v1020_v5  ;;  %862 = vmatprep.mubr.msk.bf16.mxu0 %vm956_vm2, %v955_v4  ;;  %v357_v28 = vld [vmem:[#allocation4] sm:$0xff] }
  0x19   : > { %v360_v8 = vpack.c.bf16 %v356_v7, %v356_v7  ;;  %860 = vmatprep.subr.bf16.mxu0 %v955_v4 }
  0x1a   : > { %853 = vmatpush3.bf16.msra.mxu1 %v1029_v6 }
  0x1b   : > { %866 = vmatprep.subr.bf16.mxu1 %v955_v4 }
  0x1c   : > { %861 = vmatpush3.bf16.msra.mxu0 %v1029_v6 }
  0x1d   : > { %855 = vmatmul.mubr.msk.bf16.vlgmr.msra.gmra.mxu1 %vm373_vm3, %v360_v8  ;;  %874 = vmatprep.subr.bf16.mxu0 %v955_v4 }
  0x1e   : > { %867 = vmatpush3.bf16.msra.mxu1 %v1020_v5  ;;  %870 = vmatprep.mubr.msk.bf16.mxu1 %vm956_vm2, %v955_v4 }
  0x1f   : > { %868 = vmatprep.subr.bf16.mxu1 %v955_v4 }
  0x22   : > { %869 = vmatpush3.bf16.msra.mxu1 %v1029_v6 }
  0xd7   : > { %v848_v9 = vpop.f32.mrf.mxu0 }
  0xd8   : > { %v326_v13 = vadd.f32 %v848_v9, %v788_v10 }
  0xd9   : > { %v317_v11 = vpop.f32.mrf.mxu0 }
  0xda   : > { %v318_v17 = vadd.f32 %v788_v10, %v317_v11 }
  0xdb   : > { %v849_v12 = vpop.f32.mrf.mxu0 }
  0xdc   : > { %v329_v14 = vadd.f32 %v849_v12, %v788_v10 }
  0xdd   : > { %v320_v15 = vpop.f32.mrf.mxu0  ;;  %v411_v16 = vpop.f32.mrf.mxu1 }
  0xde   : > { %v823_v18 = vpack.c.bf16 %v329_v14, %v326_v13  ;;  %v321_v19 = vadd.f32 %v788_v10, %v320_v15 }
  0xdf   : > { %v856_v20 = vpop.f32.mrf.mxu1 }
  0xe0   : > { %825 = vst [vmem:[#allocation2 + $0x8] sm:$0xff] %v823_v18   ;;  %v818_v21 = vpack.c.bf16 %v321_v19, %v318_v17 }
  0xe1   : > { %v414_v22 = vpop.f32.mrf.mxu1 }
  0xe2   : > { %819 = vst [vmem:[#allocation2] sm:$0xff] %v818_v21  }
  0xe3   : > { %v857_v23 = vpop.f32.mrf.mxu1 }
  0xe7   : > { %v520_v3 = vld [vmem:[#allocation2 + $0x8] sm:$0xff]  }
  0xe9   : > { %v358_v24 = vld [vmem:[#allocation2] sm:$0xff]  }
  0xea   : > { %v359_v25 = vunpack.c.l.bf16 %v358_v24  ;;  %v447_v45 = vunpack.c.h.bf16 %v358_v24 }
  0xec   : > { %v417_v26 = vadd.f32 %v411_v16, %v359_v25 }
  0xee   : > { %912 = vtanh.f32 %v417_v26  ;;  %v418_v29 = vsub.f32 0.0, %v417_v26  ;;  %v595_v26 = vunpack.c.h.bf16 %v520_v3 }
  0xf0   : > { %v419_v30 = vmul.f32 1.442695, %v418_v29 }
  0xf2   : > { %914 = vpow2.f32 %v419_v30 }
  0xfb   : > { %v913_v27 = vpop.eup %912 }
  0xfc   : > { %430 = vrot.lane.b32.xlu0 %v913_v27, %s957_s12 }
  0xff   : > { %v915_v31 = vpop.eup %914 }
 0x100   : > { %425 = vrot.lane.b32.xlu0 %v357_v28, %s958_s13  ;;  %v421_v32 = vadd.f32 1.0, %v915_v31 }
 0x102   : > { %916 = vrcp.f32 %v421_v32 }
 0x10f   : > { %v917_v33 = vpop.eup %916 }
 0x16e   : > { %v431_v34 = vpop.permute.xlu0 %430 }
 0x16f   : > { %v433_v35 = vmul.f32 %v917_v33, %v431_v34 }
 0x171   : > { %435 = vrot.lane.b32.xlu1 %v433_v35, %s958_s13 }
 0x172   : > { %v426_v36 = vpop.permute.xlu0 %425 }
 0x173   : > { %v428_v37 = vmul.f32 %v917_v33, %v426_v36 }
 0x1e3   : > { %v436_v38 = vpop.permute.xlu1 %435 }
 0x1e4   : > { %v438_v39 = vadd.f32 %v436_v38, %v428_v37 }
 0x1e6   : > { %918 = vtanh.f32 %v438_v39 }
 0x1f3   : > { %v919_v40 = vpop.eup %918 }
 0x1f4   : > { %441 = vrot.lane.b32.xlu1 %v919_v40, %s957_s12 }
 0x266   : > { %v442_v41 = vpop.permute.xlu1 %441 }
 0x267   : > { %v444_v42 = vmul.f32 %v917_v33, %v442_v41 }
 0x269   : > { %v448_v43 = vpack.c.bf16 %v444_v42, %v444_v42 }
 0x26b   : > { %450 = vrot.lane.b32.xlu0 %v448_v43, %s958_s13 }
 0x2dd   : > { %v451_v44 = vpop.permute.xlu0 %450 }
 0x2de   : > { %863 = vmatmul.mubr.msk.bf16.vlgmr.msra.gmra.mxu0 %vm373_vm3, %v451_v44 }
 0x2df   : > { %875 = vmatpush3.bf16.msra.mxu0 %v1020_v5  ;;  %878 = vmatprep.mubr.msk.bf16.mxu0 %vm956_vm2, %v955_v4 }
 0x2e0   : > { %876 = vmatprep.subr.bf16.mxu0 %v955_v4  ;;  %v521_v4 = vunpack.c.l.bf16 %v520_v3 }
 0x2e3   : > { %877 = vmatpush3.bf16.msra.mxu0 %v1029_v6 }
 0x39e   : > { %v489_v46 = vpop.f32.mrf.mxu0 }
 0x39f   : > { %v495_v47 = vadd.f32 %v489_v46, %v447_v45 }
 0x3a0   : > { %v864_v48 = vpop.f32.mrf.mxu0 }
 0x3a1   : > { %920 = vtanh.f32 %v495_v47  ;;  %v496_v52 = vsub.f32 0.0, %v495_v47 }
 0x3a2   : > { %v492_v49 = vpop.f32.mrf.mxu0 }
 0x3a3   : > { %v497_v53 = vmul.f32 1.442695, %v496_v52 }
 0x3a4   : > { %v865_v50 = vpop.f32.mrf.mxu0 }
 0x3a5   : > { %922 = vpow2.f32 %v497_v53 }
 0x3ae   : > { %v921_v51 = vpop.eup %920 }
 0x3af   : > { %504 = vrot.lane.b32.xlu1 %v921_v51, %s957_s12 }
 0x3b2   : > { %v923_v54 = vpop.eup %922 }
 0x3b3   : > { %v499_v55 = vadd.f32 1.0, %v923_v54 }
 0x3b5   : > { %924 = vrcp.f32 %v499_v55 }
 0x3c2   : > { %v925_v56 = vpop.eup %924 }
 0x3c3   : > { %v502_v59 = vmul.f32 %v925_v56, %v438_v39 }
 0x421   : > { %v505_v57 = vpop.permute.xlu1 %504 }
 0x422   : > { %v507_v58 = vmul.f32 %v925_v56, %v505_v57 }
 0x424   : > { %509 = vrot.lane.b32.xlu0 %v507_v58, %s958_s13 }
 0x496   : > { %v510_v60 = vpop.permute.xlu0 %509 }
 0x497   : > { %v512_v61 = vadd.f32 %v510_v60, %v502_v59 }
 0x499   : > { %926 = vtanh.f32 %v512_v61 }
 0x4a6   : > { %v927_v62 = vpop.eup %926 }
 0x4a7   : > { %515 = vrot.lane.b32.xlu1 %v927_v62, %s957_s12 }
 0x519   : > { %v516_v63 = vpop.permute.xlu1 %515 }
 0x51a   : > { %v518_v0 = vmul.f32 %v925_v56, %v516_v63 }
 0x51c   : > { %v522_v1 = vpack.c.bf16 %v518_v0, %v518_v0 }
 0x51e   : > { %524 = vrot.lane.b32.xlu0 %v522_v1, %s958_s13 }
 0x590   : > { %v525_v2 = vpop.permute.xlu0 %524 }
 0x591   : > { %871 = vmatmul.mubr.msk.bf16.vlgmr.msra.gmra.mxu1 %vm373_vm3, %v525_v2 }
 0x651   : > { %v563_v5 = vpop.f32.mrf.mxu1 }
 0x652   : > { %v569_v6 = vadd.f32 %v563_v5, %v521_v4 }
 0x653   : > { %v872_v7 = vpop.f32.mrf.mxu1 }
 0x654   : > { %928 = vtanh.f32 %v569_v6  ;;  %v570_v11 = vsub.f32 0.0, %v569_v6 }
 0x655   : > { %v566_v8 = vpop.f32.mrf.mxu1 }
 0x656   : > { %v571_v12 = vmul.f32 1.442695, %v570_v11 }
 0x657   : > { %v873_v9 = vpop.f32.mrf.mxu1 }
 0x658   : > { %930 = vpow2.f32 %v571_v12 }
 0x661   : > { %v929_v10 = vpop.eup %928 }
 0x662   : > { %578 = vrot.lane.b32.xlu1 %v929_v10, %s957_s12 }
 0x665   : > { %v931_v13 = vpop.eup %930 }
 0x666   : > { %v573_v14 = vadd.f32 1.0, %v931_v13 }
 0x668   : > { %932 = vrcp.f32 %v573_v14 }
 0x675   : > { %v933_v15 = vpop.eup %932 }
 0x676   : > { %v576_v18 = vmul.f32 %v933_v15, %v512_v61 }
 0x6d4   : > { %v579_v16 = vpop.permute.xlu1 %578 }
 0x6d5   : > { %v581_v17 = vmul.f32 %v933_v15, %v579_v16 }
 0x6d7   : > { %583 = vrot.lane.b32.xlu0 %v581_v17, %s958_s13 }
 0x749   : > { %v584_v19 = vpop.permute.xlu0 %583 }
 0x74a   : > { %v586_v20 = vadd.f32 %v584_v19, %v576_v18 }
 0x74c   : > { %934 = vtanh.f32 %v586_v20 }
 0x759   : > { %v935_v21 = vpop.eup %934 }
 0x75a   : > { %589 = vrot.lane.b32.xlu1 %v935_v21, %s957_s12 }
 0x7cc   : > { %v590_v22 = vpop.permute.xlu1 %589 }
 0x7cd   : > { %v592_v23 = vmul.f32 %v933_v15, %v590_v22 }
 0x7cf   : > { %v596_v24 = vpack.c.bf16 %v592_v23, %v592_v23 }
 0x7d1   : > { %598 = vrot.lane.b32.xlu0 %v596_v24, %s958_s13 }
 0x843   : > { %v599_v25 = vpop.permute.xlu0 %598 }
 0x844   : > { %879 = vmatmul.mubr.msk.bf16.vlgmr.msra.gmra.mxu0 %vm373_vm3, %v599_v25 }
 0x904   : > { %v637_v27 = vpop.f32.mrf.mxu0 }
 0x905   : > { %v643_v28 = vadd.f32 %v637_v27, %v595_v26 }
 0x906   : > { %v880_v29 = vpop.f32.mrf.mxu0 }
 0x907   : > { %936 = vtanh.f32 %v643_v28  ;;  %v644_v33 = vsub.f32 0.0, %v643_v28 }
 0x908   : > { %v640_v30 = vpop.f32.mrf.mxu0 }
 0x909   : > { %v645_v34 = vmul.f32 1.442695, %v644_v33 }
 0x90a   : > { %v881_v31 = vpop.f32.mrf.mxu0 }
 0x90b   : > { %938 = vpow2.f32 %v645_v34 }
 0x914   : > { %v937_v32 = vpop.eup %936 }
 0x915   : > { %652 = vrot.lane.b32.xlu1 %v937_v32, %s957_s12 }
 0x918   : > { %v939_v35 = vpop.eup %938 }
 0x919   : > { %v647_v36 = vadd.f32 1.0, %v939_v35 }
 0x91b   : > { %940 = vrcp.f32 %v647_v36 }
 0x928   : > { %v941_v37 = vpop.eup %940 }
 0x929   : > { %v650_v40 = vmul.f32 %v941_v37, %v586_v20 }
 0x987   : > { %v653_v38 = vpop.permute.xlu1 %652 }
 0x988   : > { %v655_v39 = vmul.f32 %v941_v37, %v653_v38 }
 0x98a   : > { %657 = vrot.lane.b32.xlu0 %v655_v39, %s958_s13 }
 0x9fc   : > { %v658_v41 = vpop.permute.xlu0 %657 }
 0x9fd   : > { %v660_v42 = vadd.f32 %v658_v41, %v650_v40 }
 0x9ff   : > { %942 = vtanh.f32 %v660_v42 }
 0xa0c   : > { %v943_v43 = vpop.eup %942 }
 0xa0d   : > { %663 = vrot.lane.b32.xlu1 %v943_v43, %s957_s12 }
 0xa11   : > { %673 = vrot.lane.b32.xlu1 %v660_v42, %s959_s14 }
 0xa7f   : > { %v664_v44 = vpop.permute.xlu1 %663 }
 0xa80   : > { %v666_v45 = vmul.f32 %v941_v37, %v664_v44 }
 0xa82   : > { %668 = vrot.lane.b32.xlu0 %v666_v45, %s958_s13 }
 0xa83   : > { %v674_v46 = vpop.permute.xlu1 %673 }
 0xa84   : > { %676 = vst.msk [vmem:[#allocation4] sm:$0xff] %vm373_vm3, %v674_v46 }
 0xaf1   : > { %680 = sbr.rel (%p804_p5) target bundleno = 3122 (0xc32), region = 52 }
 0xaf4   : > { %v669_v47 = vpop.permute.xlu0 %668 }
 0xaf5   : > { %671 = vst.msk [vmem:[#allocation3] sm:$0xff] %vm373_vm3, %v669_v47 }
 0xaf6   : > { %v681_v48 = vpack.c.bf16 %v666_v45, %v666_v45  ;;  %v960_v49 = vmov 0.0   ;;  %v944_v50 = vld [vmem:[%s1097_s4 + $0x8] sm:$0xff]   ;;  %vm962_vm4 = vmmov 0   ;;  %v945_v51 = vld [vmem:[%s1097_s4] sm:$0xff]   ;;  %vm751_vm5 = vcmask 15360  }
 0xaf7   : > { %882 = vmatprep.subr.bf16.mxu0 %v960_v49  ;;  %886 = vmatprep.mubr.msk.bf16.mxu0 %vm962_vm4, %v960_v49  ;;  %v805_v53 = vld [vmem:[%s1098_s5] ss:$0 sm:$0xff] }
 0xaf8   : > { %694 = vrot.lane.b32.xlu0 %v681_v48, %s961_s17  ;;  %883 = vmatpush3.bf16.msra.mxu0 %v944_v50 }
 0xaf9   : > { %884 = vmatprep.subr.bf16.mxu0 %v960_v49 }
 0xafc   : > { %885 = vmatpush3.bf16.msra.mxu0 %v945_v51 }
 0xb6a   : > { %v695_v52 = vpop.permute.xlu0 %694 }
 0xb6b   : > { %887 = vmatmul.mubr.msk.bf16.vlgmr.msra.gmra.mxu0 %vm373_vm3, %v695_v52 }
 0xc2b   : > { %v745_v54 = vpop.f32.mrf.mxu0 }
 0xc2c   : > { %v746_v55 = vadd.f32 %v805_v53, %v745_v54 }
 0xc2d   : > { %v888_v56 = vpop.f32.mrf.mxu0 }
 0xc2e   : > { %752 = vst.msk [vmem:[%s1099_s6] sm:$0xff] %vm751_vm5, %v746_v55 }
 0xc2f   : > { %v748_v57 = vpop.f32.mrf.mxu0 }
 0xc31   : > { %v889_v58 = vpop.f32.mrf.mxu0 }
 0xc32 PF: > { %s16_s21 = sadd.s32 1, %s952_s21  }
 0xc33   : > { %p13_p6 = scmp.ge.s32.totalorder %s16_s21, 4  }
 0xc35   :  { %15 = sbr.rel (!%p13_p6) target bundleno = 1 (0x1), region = 81 }

</bundles_post_ra>
